<compile_context>
chip_gen: v5e
topology: v5e:2x2
jax: 0.10.0
libtpu: 0.0.40
codegen_flags: <defaults>
</compile_context>

<pallas_src>
import functools

import jax
import jax.numpy as jnp
from jax.experimental import pallas as pl
from jax.experimental.pallas import tpu as pltpu


def _round_up(x, m):
    return ((x + m - 1) // m) * m


def _head_kernel(h_ref, w_ref, b_ref, out_ref, *, num_labels):
    # h_ref: (TB, D) f32 or bf16    w_ref: (D, Lp) same dtype as h
    # b_ref: (1, Lp) f32            out_ref: (TB, Lp) f32
    # dropout: identity at inference time.
    # classifier head: MXU matmul, f32 accumulation regardless of operand dtype.
    logits = jnp.dot(h_ref[...], w_ref[...],
                     preferred_element_type=jnp.float32)           # (TB, Lp) f32
    logits = logits + b_ref[...].astype(jnp.float32)
    # Mask padded label lanes with -inf so they drop out of max / logsumexp.
    lp = logits.shape[-1]
    lane = jax.lax.broadcasted_iota(jnp.int32, (1, lp), 1)
    logits = jnp.where(lane < num_labels, logits, -jnp.inf)
    # Numerically stable log-softmax (f32 VPU/EUP math on all generations).
    m = jnp.max(logits, axis=-1, keepdims=True)
    shifted = logits - m
    lse = jnp.log(jnp.sum(jnp.exp(shifted), axis=-1, keepdims=True))
    out_ref[...] = (shifted - lse).astype(out_ref.dtype)


def llama_embedding_classifier_head(hidden_states, w, b, *, block_b=128,
                                    matmul_dtype=None):
    """hidden_states: (B, S, D); w: (D, L); b: (L,) -> log-probs (B, L) f32."""
    B, S, D = hidden_states.shape
    L = w.shape[1]

    # (1) Only the final token is used: slice BEFORE pallas_call so only B*D
    # elements (not B*S*D) are ever moved HBM -> VMEM by the kernel.
    h_last = hidden_states[:, -1, :]                                # (B, D)
    if matmul_dtype is not None:
        h_last = h_last.astype(matmul_dtype)
        w = w.astype(matmul_dtype)

    # (2) Pad batch to sublane granularity and labels to lane granularity.
    TB = min(_round_up(B, 8), block_b)
    B_pad = _round_up(B, TB)
    L_pad = _round_up(L, 128)

    h_p = jnp.zeros((B_pad, D), h_last.dtype).at[:B].set(h_last)
    w_p = jnp.zeros((D, L_pad), w.dtype).at[:, :L].set(w)
    b_p = jnp.zeros((1, L_pad), jnp.float32).at[0, :L].set(b.astype(jnp.float32))

    grid = (B_pad // TB,)
    out = pl.pallas_call(
        functools.partial(_head_kernel, num_labels=L),
        out_shape=jax.ShapeDtypeStruct((B_pad, L_pad), jnp.float32),
        grid_spec=pltpu.PrefetchScalarGridSpec(
            num_scalar_prefetch=0,
            grid=grid,
            in_specs=[
                pl.BlockSpec((TB, D), lambda i: (i, 0)),      # batch-tiled h
                pl.BlockSpec((D, L_pad), lambda i: (0, 0)),   # weights (resident)
                pl.BlockSpec((1, L_pad), lambda i: (0, 0)),   # bias
            ],
            out_specs=pl.BlockSpec((TB, L_pad), lambda i: (i, 0)),
        ),
        compiler_params=pltpu.CompilerParams(
            dimension_semantics=("parallel",),        # shard batch across TCs
            vmem_limit_bytes=32 * 1024 * 1024,        # portable on v5e/v6e/v7x
        ),
    )(h_p, w_p, b_p)
    return out[:B, :L]


def reference_head(hidden_states, w, b):
    h = hidden_states[:, -1, :].astype(jnp.float32)
    logits = h @ w.astype(jnp.float32) + b.astype(jnp.float32)
    return jax.nn.log_softmax(logits, axis=-1)


if __name__ == "__main__":
    # Small, module-consistent shapes.
    B, S, D = 2, 8, 32          # batch, sequence length, llama hidden dim
    V, L = 100, 10              # vocab size (synthetic backbone), num_labels

    key = jax.random.PRNGKey(0)
    k_emb, k_w, k_b, k_ids = jax.random.split(key, 4)

    # Deterministic synthetic parameters.
    embed_table = jax.random.normal(k_emb, (V, D), dtype=jnp.float32) * 0.02
    w_cls = jax.random.normal(k_w, (D, L), dtype=jnp.float32) * (1.0 / jnp.sqrt(D))
    b_cls = jax.random.normal(k_b, (L,), dtype=jnp.float32) * 0.01

    # Synthetic "llama" forward: token embedding lookup -> hidden_states (B,S,D).
    input_ids = jax.random.randint(k_ids, (B, S), 0, V, dtype=jnp.int32)
    hidden_states = jnp.take(embed_table, input_ids, axis=0)   # (B, S, D)

    ref = reference_head(hidden_states, w_cls, b_cls)

    # f32 MXU operand path: bit-accurate vs the reference.
    log_probs = llama_embedding_classifier_head(hidden_states, w_cls, b_cls)
    log_probs = jax.block_until_ready(log_probs)
    assert log_probs.shape == (B, L)
    assert jnp.allclose(log_probs, ref, atol=1e-5, rtol=1e-5), (
        f"f32 path max abs err {jnp.max(jnp.abs(log_probs - ref))}")

    # bf16 MXU operand path (v6e/v7x-native), f32 accumulation + f32 softmax.
    log_probs_bf16 = llama_embedding_classifier_head(
        hidden_states, w_cls, b_cls, matmul_dtype=jnp.bfloat16)
    log_probs_bf16 = jax.block_until_ready(log_probs_bf16)
    assert jnp.allclose(log_probs_bf16, ref, atol=2e-2, rtol=2e-2), (
        f"bf16 path max abs err {jnp.max(jnp.abs(log_probs_bf16 - ref))}")

    print("KERNEL_OK")
</pallas_src>

<mosaic_0001>
module attributes {stable_mosaic.version = 11 : i64} {
  func.func @_head_kernel(%arg0: i32, %arg1: memref<8x32xf32, #tpu.memory_space<vmem>>, %arg2: memref<32x128xf32, #tpu.memory_space<vmem>>, %arg3: memref<1x128xf32, #tpu.memory_space<vmem>>, %arg4: memref<8x128xf32, #tpu.memory_space<vmem>>) attributes {dimension_semantics = [#tpu.dimension_semantics<parallel>], iteration_bounds = array<i64: 1>, scalar_prefetch = 0 : i64, scratch_operands = 0 : i64, tpu.core_type = #tpu.core_type<tc>, window_params = [{transform_indices = @transform_0, window_bounds = array<i64: 8, 32>}, {pipeline_mode = #tpu.pipeline_mode<synchronous>, transform_indices = @transform_1, window_bounds = array<i64: 32, 128>}, {pipeline_mode = #tpu.pipeline_mode<synchronous>, transform_indices = @transform_2, window_bounds = array<i64: 1, 128>}, {transform_indices = @transform_3, window_bounds = array<i64: 8, 128>}]} {
    %c0 = arith.constant 0 : index
    %c0_0 = arith.constant 0 : index
    %0 = vector.load %arg1[%c0, %c0_0] : memref<8x32xf32, #tpu.memory_space<vmem>>, vector<8x32xf32>
    %c0_1 = arith.constant 0 : index
    %c0_2 = arith.constant 0 : index
    %1 = vector.load %arg2[%c0_1, %c0_2] : memref<32x128xf32, #tpu.memory_space<vmem>>, vector<32x128xf32>
    %cst = arith.constant dense<0.000000e+00> : vector<8x128xf32>
    %2 = tpu.matmul %0, %1, %cst {dimension_numbers = #tpu.dot_dimension_numbers<[1], [0], [0], [1], [0, 0, 1, 1], [], []>} : vector<8x32xf32>, vector<32x128xf32>, vector<8x128xf32> -> vector<8x128xf32>
    %c0_3 = arith.constant 0 : index
    %c0_4 = arith.constant 0 : index
    %3 = vector.load %arg3[%c0_3, %c0_4] : memref<1x128xf32, #tpu.memory_space<vmem>>, vector<1x128xf32>
    %4 = vector.broadcast %3 : vector<1x128xf32> to vector<8x128xf32>
    %5 = arith.addf %2, %4 : vector<8x128xf32>
    %6 = tpu.iota {dimensions = array<i32: 1>} : vector<1x128xi32>
    %c10_i32 = arith.constant 10 : i32
    %7 = vector.broadcast %c10_i32 : i32 to vector<1x128xi32>
    %8 = arith.cmpi slt, %6, %7 : vector<1x128xi32>
    %cst_5 = arith.constant 0xFF800000 : f32
    %9 = vector.shape_cast %8 : vector<1x128xi1> to vector<1x128xi1>
    %10 = vector.broadcast %9 : vector<1x128xi1> to vector<8x128xi1>
    %11 = vector.broadcast %cst_5 : f32 to vector<8x128xf32>
    %12 = arith.select %10, %5, %11 : vector<8x128xi1>, vector<8x128xf32>
    %cst_6 = arith.constant dense<0xFF800000> : vector<8xf32>
    %13 = vector.multi_reduction <maximumf>, %12, %cst_6 [1] : vector<8x128xf32> to vector<8xf32>
    %14 = vector.shape_cast %13 : vector<8xf32> to vector<8x1xf32>
    %15 = vector.broadcast %14 : vector<8x1xf32> to vector<8x128xf32>
    %16 = arith.subf %12, %15 : vector<8x128xf32>
    %17 = math.exp %16 : vector<8x128xf32>
    %cst_7 = arith.constant dense<0.000000e+00> : vector<8xf32>
    %18 = vector.multi_reduction <add>, %17, %cst_7 [1] : vector<8x128xf32> to vector<8xf32>
    %19 = vector.shape_cast %18 : vector<8xf32> to vector<8x1xf32>
    %20 = math.log %19 : vector<8x1xf32>
    %21 = vector.broadcast %20 : vector<8x1xf32> to vector<8x128xf32>
    %22 = arith.subf %16, %21 : vector<8x128xf32>
    %c0_8 = arith.constant 0 : index
    %c0_9 = arith.constant 0 : index
    %23 = vector.load %arg4[%c0_8, %c0_9] : memref<8x128xf32, #tpu.memory_space<vmem>>, vector<8x128xf32>
    tpu.vector_store %arg4[%c0_8, %c0_9], %22 {strides = array<i32>} : memref<8x128xf32, #tpu.memory_space<vmem>>, vector<8x128xf32>,
    return
  }
  func.func @transform_0(%arg0: i32) -> (i32, i32) {
    %c0_i32 = arith.constant 0 : i32
    %c0_i32_0 = arith.constant 0 : i32
    return %arg0, %c0_i32 : i32, i32
  }
  func.func @transform_1(%arg0: i32) -> (i32, i32) {
    %c0_i32 = arith.constant 0 : i32
    %c0_i32_0 = arith.constant 0 : i32
    %c0_i32_1 = arith.constant 0 : i32
    return %c0_i32, %c0_i32_0 : i32, i32
  }
  func.func @transform_2(%arg0: i32) -> (i32, i32) {
    %c0_i32 = arith.constant 0 : i32
    %c0_i32_0 = arith.constant 0 : i32
    %c0_i32_1 = arith.constant 0 : i32
    return %c0_i32, %c0_i32_0 : i32, i32
  }
  func.func @transform_3(%arg0: i32) -> (i32, i32) {
    %c0_i32 = arith.constant 0 : i32
    %c0_i32_0 = arith.constant 0 : i32
    return %arg0, %c0_i32 : i32, i32
  }
}

</mosaic_0001>

<bundles_post_ra>
// kernel: tpu_custom_call.1
= control target key start
LH: loop header
LB: loop body
LE: loop exit
PB: predicated region body
PF: predicated region fallthrough
CT: control target
= control target key end

     0   :  { %8 = vsyncpa [#allocation3], 0  ;;  %s239_s0 = inlined_call_operand.hbm [shape: f32[8,32], index: 0, kind: input, shape index: {}]   ;;  %s240_s1 = inlined_call_operand.hbm [shape: f32[32,128], index: 1, kind: input, shape index: {}]   ;;  %s241_s2 = inlined_call_operand.vmem [shape: f32[1,128], index: 2, kind: input, shape index: {}]   ;;  %s242_s3 = inlined_call_operand.hbm [shape: f32[8,128], index: 3, kind: output, shape index: {}]  }
   0x1   :  { %9 = vsyncpa [#allocation6], 0 }
   0x2   :  { %10 = vsyncpa [#allocation4], 0  ;;  %s16_s14 = sshll.u32 %s239_s0, 4  ;;  %s202_s15 = smov [#allocation2]   ;;  %s17_s14 = int_to_ptr.hbm [resolvable:$true] %s16_s14 }
   0x3   :  { %s18_s16 = sshll.u32 %s202_s15, 4  ;;  %s26_s19 = sshll.u32 %s240_s1, 4  ;;  %s19_s16 = int_to_ptr.vmem [resolvable:$true] %s18_s16  ;;  %s27_s19 = int_to_ptr.hbm [resolvable:$true] %s26_s19 }
   0x4   :  { %21 = dma.hbm_to_vmem [thread:$0]  %s17_s14, 128, %s19_s16, [#allocation3]  }
   0x5   :  { %s203_s20 = smov [#allocation5]   ;;  %s204_s22 = smov 128  }
   0x6   :  { %s28_s21 = sshll.u32 %s203_s20, 4  ;;  %s205_s23 = smov 8   ;;  %s29_s21 = int_to_ptr.vmem [resolvable:$true] %s28_s21 }
   0x7   :  { %34 = dma.hbm_to_vmem [thread:$0]  %s27_s19, 512, %s29_s21, [#allocation6], %s204_s22, %s204_s22, %s205_s23  }
   0x8   :  { %196 = dma.done.wait [#allocation3], 128  }
   0x9   :  { %197 = vsyncadd [#allocation3], 4294967168 }
   0xa   :  { %198 = dma.done.wait [#allocation6], 512  }
   0xb   :  { %199 = vsyncadd [#allocation6], 4294966784  ;;  %v49_v0 = vld [vmem:[#allocation5 + $0x18] sm:$0xff]  ;;  %v48_v1 = vld [vmem:[#allocation5 + $0x10] sm:$0xff]  ;;  %vm54_vm0 = vcmask 261120   ;;  %v78_v5 = vlaneseq  ;;  %s206_s24 = smov [#allocation7]  }
   0xc   :  { %70 = vmatpush.msra.mxu0 %v49_v0  ;;  %v47_v2 = vld [vmem:[#allocation5 + $0x8] sm:$0xff]  ;;  %v46_v3 = vld [vmem:[#allocation5] sm:$0xff]  ;;  %v45_v4 = vld [vmem:[#allocation2] sm:$0xff]  ;;  %s100_s25 = sshll.u32 %s206_s24, 4  ;;  %s101_s25 = int_to_ptr.vmem [resolvable:$true] %s100_s25 }
   0xd   :  { %v79_v6 = vand.u32 127, %v78_v5  ;;  %v119_v7 = vld [vmem:[%s241_s2] ss:$0 sm:$0xff]  ;;  %s102_s2 = sshll.u32 %s242_s3, 4  ;;  %s103_s2 = int_to_ptr.hbm [resolvable:$true] %s102_s2 }
   0xe   :  { %71 = vmatpush.msra.mxu0 %v48_v1 }
   0xf   :  { %vm80_vm1 = vcmp.lt.s32.totalorder %v79_v6, 10 }
  0x10   :  { %72 = vmatpush.msra.mxu0 %v47_v2 }
  0x12   :  { %73 = vmatpush.msra.mxu0 %v46_v3 }
  0x13   :  { %113 = vmatmul.msk.f32.vlgmr.msra.gmra.mxu0 %vm54_vm0, %v45_v4 }
  0x90   :  { %v75_v8 = vpop.f32.mrf.mxu0 }
  0x91   :  { %v76_v9 = vadd.f32 %v119_v7, %v75_v8 }
  0x93   :  { %v83_v10 = vsel %vm80_vm1, %v76_v9, -inf }
  0x94   :  { %84 = vmax.xlane.f32.xlu0 %v83_v10 }
 0x107   :  { %v85_v11 = vpop.xlane.xlu0 %84 }
 0x108   :  { %v86_v12 = vsub.f32 %v83_v10, %v85_v11 }
 0x10a   :  { %v87_v13 = vmul.f32 1.442695, %v86_v12 }
 0x10c   :  { %120 = vpow2.f32 %v87_v13 }
 0x112   :  { %v121_v14 = vpop.eup %120 }
 0x113   :  { %89 = vadd.xlane.f32.xlu0 %v121_v14 }
 0x186   :  { %v90_v15 = vpop.xlane.xlu0 %89 }
 0x187   :  { %122 = vlog2.f32 %v90_v15 }
 0x18d   :  { %v123_v16 = vpop.eup %122 }
 0x18e   :  { %v92_v17 = vmul.f32 0.6931472, %v123_v16 }
 0x190   :  { %v93_v18 = vsub.f32 %v86_v12, %v92_v17 }
 0x192   :  { %94 = vst [vmem:[#allocation7] sm:$0xff] %v93_v18 }
 0x193   :  { %105 = dma.vmem_to_hbm [thread:$0]  %s101_s25, 128, %s103_s2, [#allocation4]  }
 0x194   :  { %200 = dma.done.wait [#allocation4], 128  }
 0x195   :  { %201 = vsyncadd [#allocation4], 4294967168 }
 0x196   :  { %110 = vsyncpa [#allocation3], 1 }
 0x197   :  { %111 = vsyncpa [#allocation6], 1 }
 0x198   :  { %112 = vsyncpa [#allocation4], 1 }

</bundles_post_ra>
